<compile_context>
chip_gen: v6e
topology: v6e:2x2x1
jax: 0.10.0
libtpu: 0.0.40
codegen_flags: <defaults>
</compile_context>

<pallas_src>
import math

import jax
import jax.numpy as jnp
from jax.experimental import pallas as pl
from jax.experimental.pallas import tpu as pltpu


_SUBLANE = 8
_TARGET_TILE_BYTES = 4 * 1024 * 1024   # ~4 MiB per x tile (~24 MiB live)
_VMEM_LIMIT_BYTES = 48 * 1024 * 1024   # safe on v5e/v6e (128 MiB) and v7x (64 MiB)


def _build_pe_table(d_model: int, max_len: int = 5000,
                    dtype=jnp.float32) -> jnp.ndarray:
    """Sinusoidal positional-encoding buffer, shape (max_len, d_model).

    Built once at init (same formula as the PyTorch __init__) and stored in
    the activation dtype so the forward path never re-casts it.
    """
    position = jnp.arange(0, max_len, dtype=jnp.float32)[:, None]          # (max_len, 1)
    div_term = jnp.exp(
        jnp.arange(0, d_model, 2, dtype=jnp.float32)
        * (-math.log(10000.0) / d_model)
    )                                                                       # (ceil(d/2),)
    angles = position * div_term                                            # (max_len, d/2)
    pe = jnp.zeros((max_len, d_model), dtype=jnp.float32)
    pe = pe.at[:, 0::2].set(jnp.sin(angles))
    pe = pe.at[:, 1::2].set(jnp.cos(angles)[:, : d_model // 2])
    return pe.astype(dtype)


def _pe_add_kernel(x_ref, pe_ref, o_ref):
    # Batch dim is squeezed out by the BlockSpecs: all refs are (S_TILE, D).
    o_ref[...] = x_ref[...] + pe_ref[...]


def _choose_s_tile(S: int, B: int, D: int, itemsize: int) -> int:
    """~4 MiB per x tile, a multiple of 8 sublanes, capped at the full S.

    If the whole S fits in one tile and B is also tiny, split S so the leading
    grid axis has >=2 iterations (lets v7x megacore shard by S-tile while each
    TC keeps the B-innermost pe-DMA reuse).
    """
    tile = _TARGET_TILE_BYTES // max(1, D * itemsize)
    tile = max(_SUBLANE, (tile // _SUBLANE) * _SUBLANE)
    if tile >= S:
        if B < 2 and S >= 2 * _SUBLANE:
            half = -(-((S + 1) // 2) // _SUBLANE) * _SUBLANE
            return min(half, S)
        return S  # full dim -> always a legal block shape
    return tile


def positional_encoding_forward(x: jnp.ndarray, pe_table: jnp.ndarray,
                                *, s_tile: int | None = None,
                                donate_x: bool = False) -> jnp.ndarray:
    """x: (B, S, D); pe_table: (max_len, D) in x.dtype. Returns x + pe[:S]."""
    B, S, D = x.shape
    max_len, d_model = pe_table.shape
    if S > max_len:
        raise ValueError(f"sequence length {S} exceeds max_len {max_len}")
    if D != d_model:
        raise ValueError(f"d_model mismatch: x has {D}, pe table has {d_model}")
    if pe_table.dtype != x.dtype:
        # Fallback only; prefer building the table in the activation dtype at init.
        pe_table = pe_table.astype(x.dtype)

    itemsize = x.dtype.itemsize
    if s_tile is None:
        s_tile = _choose_s_tile(S, B, D, itemsize)
    num_s_tiles = pl.cdiv(S, s_tile)

    # Pass the full table when every block window stays within max_len (the
    # common case, since max_len >> S); avoids a per-call slice copy.
    pe_in = pe_table if num_s_tiles * s_tile <= max_len else pe_table[:S, :]

    cost = pl.CostEstimate(
        flops=int(B * S * D),
        transcendentals=0,
        # x read + out write + pe read once per S-tile (amortized over B).
        bytes_accessed=int((2 * B * S * D + num_s_tiles * s_tile * D) * itemsize),
    )

    call_kwargs = {}
    if donate_x:
        # Same shape/dtype in and out (no padding) -> alias x with the output.
        call_kwargs["input_output_aliases"] = {0: 0}

    return pl.pallas_call(
        _pe_add_kernel,
        out_shape=jax.ShapeDtypeStruct((B, S, D), x.dtype),
        grid_spec=pltpu.PrefetchScalarGridSpec(
            num_scalar_prefetch=0,
            grid=(num_s_tiles, B),  # B innermost -> pe DMA amortized over batch
            in_specs=[
                pl.BlockSpec((pl.Squeezed(), s_tile, D), lambda s, b: (b, s, 0)),
                pl.BlockSpec((s_tile, D), lambda s, b: (s, 0)),
            ],
            out_specs=pl.BlockSpec((pl.Squeezed(), s_tile, D), lambda s, b: (b, s, 0)),
        ),
        compiler_params=pltpu.CompilerParams(
            dimension_semantics=("parallel", "parallel"),
            vmem_limit_bytes=_VMEM_LIMIT_BYTES,
        ),
        cost_estimate=cost,
        **call_kwargs,
    )(x, pe_in)


if __name__ == "__main__":
    key0, key1 = jax.random.split(jax.random.PRNGKey(0))

    # Case 1: module-like small shape (B=2, S=8, d_model=32); D stays unpadded
    # (full-dim last block), masked stores handle the non-128 lane width.
    B, S, D = 2, 8, 32
    MAX_LEN = 64  # small synthetic max_len; formula identical to the module's 5000
    x = jax.random.normal(key0, (B, S, D), dtype=jnp.float32)
    pe_table = _build_pe_table(D, MAX_LEN, dtype=x.dtype)
    out = jax.block_until_ready(positional_encoding_forward(x, pe_table))
    ref = x + pe_table[None, :S, :]
    assert out.shape == (B, S, D)
    assert jnp.allclose(out, ref, atol=1e-6, rtol=1e-6)

    # Case 2: lane-dense d_model, multi-tile S grid with a PARTIAL last tile
    # (S=20, s_tile=8 -> 3 tiles), exercising pe reuse across the innermost
    # batch axis and the full-table row indexing.
    B2, S2, D2 = 2, 20, 256
    x2 = jax.random.normal(key1, (B2, S2, D2), dtype=jnp.float32)
    pe_table2 = _build_pe_table(D2, 64, dtype=x2.dtype)
    out2 = jax.block_until_ready(
        positional_encoding_forward(x2, pe_table2, s_tile=8))
    ref2 = x2 + pe_table2[None, :S2, :]
    assert out2.shape == (B2, S2, D2)
    assert jnp.allclose(out2, ref2, atol=1e-6, rtol=1e-6)

    # Case 3: B=1 so the auto-tiler splits S into >=2 tiles (v7x megacore path),
    # plus input/output aliasing.
    B3, S3, D3 = 1, 32, 128
    x3 = jax.random.normal(key0, (B3, S3, D3), dtype=jnp.float32)
    pe_table3 = _build_pe_table(D3, 64, dtype=x3.dtype)
    out3 = jax.block_until_ready(
        positional_encoding_forward(x3, pe_table3, donate_x=True))
    ref3 = x3 + pe_table3[None, :S3, :]
    assert out3.shape == (B3, S3, D3)
    assert jnp.allclose(out3, ref3, atol=1e-6, rtol=1e-6)

    print("KERNEL_OK")
</pallas_src>

<mosaic_0001>
module attributes {stable_mosaic.version = 11 : i64} {
  func.func @_pe_add_kernel(%arg0: i32, %arg1: i32, %arg2: memref<1x8x32xf32, #tpu.memory_space<vmem>>, %arg3: memref<8x32xf32, #tpu.memory_space<vmem>>, %arg4: memref<1x8x32xf32, #tpu.memory_space<vmem>>) attributes {dimension_semantics = [#tpu.dimension_semantics<parallel>, #tpu.dimension_semantics<parallel>], iteration_bounds = array<i64: 1, 2>, scalar_prefetch = 0 : i64, scratch_operands = 0 : i64, tpu.core_type = #tpu.core_type<tc>, window_params = [{transform_indices = @transform_0, window_bounds = array<i64: 1, 8, 32>}, {transform_indices = @transform_1, window_bounds = array<i64: 8, 32>}, {transform_indices = @transform_2, window_bounds = array<i64: 1, 8, 32>}]} {
    %c0 = arith.constant 0 : index
    %c0_0 = arith.constant 0 : index
    %c0_1 = arith.constant 0 : index
    %0 = vector.load %arg2[%c0, %c0_0, %c0_1] : memref<1x8x32xf32, #tpu.memory_space<vmem>>, vector<1x8x32xf32>
    %1 = vector.shape_cast %0 : vector<1x8x32xf32> to vector<8x32xf32>
    %c0_2 = arith.constant 0 : index
    %c0_3 = arith.constant 0 : index
    %2 = vector.load %arg3[%c0_2, %c0_3] : memref<8x32xf32, #tpu.memory_space<vmem>>, vector<8x32xf32>
    %3 = arith.addf %1, %2 : vector<8x32xf32>
    %c0_4 = arith.constant 0 : index
    %c0_5 = arith.constant 0 : index
    %c0_6 = arith.constant 0 : index
    %4 = vector.load %arg4[%c0_4, %c0_5, %c0_6] : memref<1x8x32xf32, #tpu.memory_space<vmem>>, vector<1x8x32xf32>
    %5 = vector.shape_cast %4 : vector<1x8x32xf32> to vector<8x32xf32>
    %6 = vector.shape_cast %3 : vector<8x32xf32> to vector<1x8x32xf32>
    tpu.vector_store %arg4[%c0_4, %c0_5, %c0_6], %6 {strides = array<i32>} : memref<1x8x32xf32, #tpu.memory_space<vmem>>, vector<1x8x32xf32>,
    return
  }
  func.func @transform_0(%arg0: i32, %arg1: i32) -> (i32, i32, i32) {
    %c0_i32 = arith.constant 0 : i32
    %c0_i32_0 = arith.constant 0 : i32
    return %arg1, %arg0, %c0_i32 : i32, i32, i32
  }
  func.func @transform_1(%arg0: i32, %arg1: i32) -> (i32, i32) {
    %c0_i32 = arith.constant 0 : i32
    %c0_i32_0 = arith.constant 0 : i32
    return %arg0, %c0_i32 : i32, i32
  }
  func.func @transform_2(%arg0: i32, %arg1: i32) -> (i32, i32, i32) {
    %c0_i32 = arith.constant 0 : i32
    %c0_i32_0 = arith.constant 0 : i32
    return %arg1, %arg0, %c0_i32 : i32, i32, i32
  }
}

</mosaic_0001>

<bundles_post_ra>
// kernel: tpu_custom_call.1
= control target key start
LH: loop header
LB: loop body
LE: loop exit
PB: predicated region body
PF: predicated region fallthrough
CT: control target
= control target key end

     0   :  { %7 = vsyncpa [#allocation3], 0  ;;  %s550_s0 = inlined_call_operand.vmem [shape: f32[2,8,32], index: 0, kind: input, shape index: {}]   ;;  %s551_s1 = inlined_call_operand.vmem [shape: f32[64,32], index: 1, kind: input, shape index: {}]   ;;  %s552_s2 = inlined_call_operand.hbm [shape: f32[2,8,32], index: 2, kind: output, shape index: {}]  }
   0x1   :  { %9 = vsyncpa [#allocation3 + $0x1], 0  ;;  %s448_s9 = smov 0   ;;  %s450_s10 = smov 0  }
   0x2   :  { %s452_s11 = smov 0   ;;  %s454_s12 = smov 0  }
   0x3   :  { %s456_s13 = smov 0   ;;  %s458_s14 = smov 0  }
   0x4 LB: > { %s287_s15 = sadd.s32 4294967295, %s430_s14   ;;  %s288_s16 = sadd.s32 4294967294, %s430_s14   ;;  %s430_s14 = sphi %s458_s14, %s15_s14   ;;  %s426_s13 = sphi %s456_s13, %s559_s13   ;;  %s422_s12 = sphi %s454_s12, %s558_s12   ;;  %s418_s11 = sphi %s452_s11, %s557_s11   ;;  %s414_s10 = sphi %s450_s10, %s556_s10   ;;  %s410_s9 = sphi %s448_s9, %s555_s9  }
   0x5   : > { %s24_s17 = sadd.s32 1, %s426_s13  ;;  %s90_s18 = sadd.s32 1, %s418_s11 }
   0x6   : > { %p25_p0 = scmp.ge.s32.totalorder %s24_s17, 2  ;;  %p100_p1 = scmp.ne.s32.totalorder %s418_s11, %s414_s10 }
   0x7   : > { %p101_p2 = scmp.eq.s32.totalorder %s287_s15, 1  ;;  %p106_p3 = scmp.ne.s32.totalorder %s414_s10, %s410_s9 }
   0x8   : > { %s561_s17 = smov (%p25_p0, %s24_s17), 0  ;;  %p107_p5 = scmp.eq.s32.totalorder %s288_s16, 1 }
   0x9   : > { %p488_p4 = por %p101_p2, %p100_p1  ;;  %s85_s20 = ssub.s32 %s426_s13, %s561_s17 }
   0xa   : > { %p292_p6 = scmp.ge.s32.totalorder %s430_s14, 1  ;;  %p88_p7 = scmp.eq.s32.totalorder %s85_s20, 0 }
   0xb   : > { %p495_p8 = por %p107_p5, %p106_p3  ;;  %p142_p9 = scmp.lt.s32.totalorder %s430_s14, 3 }
   0xc   : > { %s501_s22 = scalar_select %p88_p7, %s418_s11, %s90_s18  }
   0xd   : > { %p143_p10 = pnand %p292_p6, %p142_p9 }
   0xe   : > { %s167_s23 = sand.u32 (!%p143_p10), 1, %s414_s10   ;;  %p170_p11 = scmp.lt.s32.totalorder (!%p143_p10), %s422_s12, 1 }
   0xf   : > { %146 = sbr.rel (%p143_p10) target bundleno = 42 (0x2a), region = 28  ;;  %s293_s24 = sshll.u32 (!%p143_p10), %s167_s23, 3 }
  0x10   : > { %s296_s26 = sshll.u32 (!%p143_p10), %s422_s12, 7  ;;  %s169_s30 = scalar_lea.vmem (!%p143_p10), [#allocation2], %s293_s24 }
  0x11   : > { %s201_s3 = sshll.u32 (!%p143_p10), %s169_s30, 4  ;;  %s199_s15 = scalar_lea.hbm (!%p143_p10), %s552_s2, %s296_s26  ;;  %s202_s3 = int_to_ptr.vmem [resolvable:$true] %s201_s3 }
  0x12   : > { %s354_s16 = scalar_lea.vmem (!%p143_p10), %s202_s3, 128  ;;  %s432_s18 = smov (!%p143_p10), [#allocation2]  }
  0x13   : > { %p355_p12 = scmp.ne.s32.totalorder (!%p143_p10), %s202_s3, %s354_s16  ;;  %s358_s20 = sshll.u32 (!%p143_p10), %s432_s18, 4  ;;  %s359_s20 = int_to_ptr.vmem [resolvable:$false] %s358_s20 }
  0x14   : > { %s171_s25 = scalar_select %p170_p11, %s422_s12, 1  ;;  %v182_v0 = vld [vmem:[%s551_s1] sm:$0xff]  ;;  %vm184_vm0 = vcmask 261120  }
  0x15   : > { %s187_s12 = scalar_lea.sflag [#allocation3], %s167_s23  ;;  %p356_p13 = pnand %p355_p12, %p488_p4 }
  0x16   : > { %s294_s27 = sshll.u32 %s171_s25, 3  ;;  %s360_s24 = scalar_lea.vmem %s359_s20, 256 }
  0x17   : > { %s176_s6 = scalar_lea.vmem %s550_s0, %s294_s27  ;;  %p357_p0 = pneg %p356_p13 }
  0x18   : > { %v181_v1 = vld [vmem:[%s176_s6] sm:$0xff]  ;;  %p361_p1 = scmp.lt.s32.totalorder %s202_s3, %s359_s20  ;;  %p362_p2 = scmp.lt.s32.totalorder %s360_s24, %s354_s16 }
  0x19   : > { %v183_v2 = vadd.f32 %v182_v0, %v181_v1 }
  0x1a   : > { %p363_p3 = por %p362_p2, %p361_p1 }
  0x1b   : > { %185 = vst.msk [vmem:[%s169_s30] sm:$0xff] %vm184_vm0, %v183_v2 }
  0x1c   : > { %p364_p5 = pnand %p363_p3, %p357_p0 }
  0x1e   : > { %367 = shalt.err (!%p364_p5)
}
  0x1f   : > { %s368_s25 = scalar_lea.hbm %s199_s15, 128  ;;  %s372_s27 = scalar_lea.hbm %s552_s2, 256 }
  0x20   : > { %p369_p6 = scmp.ne.s32.totalorder %s199_s15, %s368_s25  ;;  %p373_p10 = scmp.lt.s32.totalorder %s199_s15, %s552_s2 }
  0x21   : > { %p374_p11 = scmp.lt.s32.totalorder %s372_s27, %s368_s25 }
  0x22   : > { %p370_p7 = pnand %p369_p6, %p488_p4 }
  0x23   : > { %p375_p12 = por %p374_p11, %p373_p10 }
  0x24   : > { %p371_p9 = pneg %p370_p7 }
  0x26   : > { %p376_p13 = pnand %p375_p12, %p371_p9 }
  0x28   : > { %379 = shalt.err (!%p376_p13)
}
  0x29   : > { %299 = dma.vmem_to_hbm [thread:$0]  (%p488_p4), %s202_s3, 128, %s199_s15, %s187_s12  }
  0x2a PF: > { %p305_p0 = scmp.ge.s32.totalorder %s430_s14, 2  ;;  %s213_s30 = sand.u32 1, %s410_s9  }
  0x2b   : > { %s214_s4 = scalar_lea.sflag [#allocation3], %s213_s30 }
  0x2c   : > { %p302_p1 = pnand %p305_p0, %p495_p8 }
  0x2e   : > { %p303_p2 = pneg %p302_p1 }
  0x30   : > { %405 = dma.done.wait (%p303_p2), %s214_s4, 128  }
  0x31   : > { %407 = vsyncadd (%p303_p2), %s214_s4, 4294967168  ;;  %s15_s14 = sadd.s32 1, %s430_s14   ;;  %s555_s9 = smov %s414_s10 }
  0x32   : > { %p12_p3 = scmp.ge.s32.totalorder %s15_s14, 4   ;;  %s556_s10 = smov %s418_s11 }
  0x33   : > { %s557_s11 = smov %s501_s22  ;;  %s558_s12 = smov %s426_s13 }
  0x34   : > { %s559_s13 = smov %s561_s17  ;;  %14 = sbr.rel (!%p12_p3) target bundleno = 4 (0x4), region = 66 }
  0x39   :  { %219 = vsyncpa [#allocation3], 1 }
  0x3a   :  { %221 = vsyncpa [#allocation3 + $0x1], 1 }

</bundles_post_ra>
